<compile_context>
chip_gen: v7x
topology: tpu7x:2x2x1
jax: 0.10.0
libtpu: 0.0.40
codegen_flags: <defaults>
</compile_context>

<pallas_src>
import jax
import jax.numpy as jnp
from jax.experimental import pallas as pl
from jax.experimental.pallas import tpu as pltpu

CLIP = 0.2
# ENTROPY_COEF is a module-level global in the original train.py; fixed here.
ENTROPY_COEF = 1e-2

_LANES = 128      # TPU vreg lane width
_SUBLANES = 8     # f32 sublane tile


def _actor_loss_kernel(prob_ref, old_ref, adv_ref, ent_ref, partial_ref):
    # Load in native dtype, widen to f32 in-register (no f32 copies in HBM).
    prob = prob_ref[...].astype(jnp.float32)
    old = old_ref[...].astype(jnp.float32)
    adv = adv_ref[...].astype(jnp.float32)
    ent = ent_ref[...].astype(jnp.float32)

    rel = prob / old
    clipped = jnp.clip(rel, 1.0 - CLIP, 1.0 + CLIP)
    loss = jnp.minimum(clipped * adv, rel * adv) + jnp.float32(ENTROPY_COEF) * ent

    # Per-block partial sum as an (8, 128) vreg tile: tile-aligned reshape plus
    # elementwise VPU adds only; the cross-lane/sublane reduce happens once, in
    # the wrapper, on (num_blocks, 8, 128) f32.
    rows = loss.shape[0]
    partial_ref[0] = jnp.sum(
        loss.reshape(rows // _SUBLANES, _SUBLANES, _LANES), axis=0)


def _sublane_multiple(*dtypes):
    mult = _SUBLANES
    for dt in dtypes:
        itemsize = jnp.dtype(dt).itemsize
        mult = max(mult, {4: 8, 2: 16, 1: 32}.get(itemsize, 8))
    return mult


def _round_up(x, m):
    return ((x + m - 1) // m) * m


def actor_loss(prob_action, old_prob_action, advantage, entropy, *, max_block_rows=2048):
    """Pallas TPU actor loss. All inputs share the same shape; returns a scalar."""
    assert prob_action.shape == old_prob_action.shape == advantage.shape == entropy.shape
    n = int(prob_action.size)
    assert n > 0

    sub = _sublane_multiple(prob_action.dtype, old_prob_action.dtype,
                            advantage.dtype, entropy.dtype)

    # Lane-dense layout: (rows, 128) with rows aligned to the sublane tile.
    rows = _round_up(pl.cdiv(n, _LANES), sub)
    max_block_rows = max(sub, _round_up(max_block_rows, sub))
    if rows <= max_block_rows:
        block_rows = rows
        num_blocks = 1
    else:
        # Balance rows across blocks so padding never exceeds ~one sublane tile
        # (avoids the rows=1025 -> 2048 pathological round-up).
        num_blocks = pl.cdiv(rows, max_block_rows)
        block_rows = _round_up(pl.cdiv(rows, num_blocks), sub)
        num_blocks = pl.cdiv(rows, block_rows)
    rows_padded = num_blocks * block_rows
    n_padded = rows_padded * _LANES

    def _lane_dense(x, fill):
        flat = jnp.ravel(x)
        if n_padded != n:
            # Neutral fill: rel == 1, adv == 0, ent == 0 -> exactly 0 contribution.
            flat = jnp.pad(flat, (0, n_padded - n), constant_values=fill)
        return flat.reshape(rows_padded, _LANES)

    prob2d = _lane_dense(prob_action, 1)
    old2d = _lane_dense(old_prob_action, 1)
    adv2d = _lane_dense(advantage, 0)
    ent2d = _lane_dense(entropy, 0)

    in_spec = pl.BlockSpec((block_rows, _LANES), lambda i: (i, 0))

    # 2048-row blocks: 1 MiB/input block * 4 inputs * 2 buffers = 8 MiB, inside
    # every generation's default scoped-VMEM limit (incl. v5e's 16 MiB).
    # TODO(synk): on v6e/v7x, max_block_rows=4096 (+vmem_limit_bytes) shaves a
    # few % of per-step overhead; kept one portable default here.
    partials = pl.pallas_call(
        _actor_loss_kernel,
        out_shape=jax.ShapeDtypeStruct((num_blocks, _SUBLANES, _LANES), jnp.float32),
        grid=(num_blocks,),
        in_specs=[in_spec, in_spec, in_spec, in_spec],
        out_specs=pl.BlockSpec((1, _SUBLANES, _LANES), lambda i: (i, 0, 0)),
        compiler_params=pltpu.CompilerParams(
            dimension_semantics=("parallel",)),  # independent blocks -> megacore on v7x
    )(prob2d, old2d, adv2d, ent2d)

    return -jnp.sum(partials) / jnp.float32(n)


def actor_loss_ref(prob_action, old_prob_action, advantage, entropy):
    rel = prob_action / old_prob_action
    clipped = jnp.clip(rel, 1.0 - CLIP, 1.0 + CLIP)
    loss = jnp.minimum(clipped * advantage, rel * advantage) + ENTROPY_COEF * entropy
    return -jnp.mean(loss)


if __name__ == "__main__":
    key = jax.random.PRNGKey(0)
    ks = jax.random.split(key, 12)

    def _check(p, o, a, e, **kw):
        out = actor_loss(p, o, a, e, **kw)
        jax.block_until_ready(out)
        ref = actor_loss_ref(p, o, a, e)
        assert jnp.allclose(out, ref, rtol=1e-5, atol=1e-5), (out, ref)

    # Case 1: Walker2d-style small batch (32, 8) — single padded block.
    p1 = jax.random.uniform(ks[0], (32, 8), jnp.float32, 0.1, 2.0)
    o1 = jax.random.uniform(ks[1], (32, 8), jnp.float32, 0.1, 2.0)
    a1 = jax.random.normal(ks[2], (32, 8), jnp.float32)
    e1 = jax.random.uniform(ks[3], (32, 8), jnp.float32, 0.0, 1.0)
    _check(p1, o1, a1, e1)

    # Case 2: ragged (non-multiple-of-128) size with a forced multi-block,
    # fully parallel grid — exercises the padding + per-block partial-sum path.
    p2 = jax.random.uniform(ks[4], (300, 6), jnp.float32, 0.1, 2.0)
    o2 = jax.random.uniform(ks[5], (300, 6), jnp.float32, 0.1, 2.0)
    a2 = jax.random.normal(ks[6], (300, 6), jnp.float32)
    e2 = jax.random.uniform(ks[7], (300, 6), jnp.float32, 0.0, 1.0)
    _check(p2, o2, a2, e2, max_block_rows=8)

    # Case 3: aligned size — no jnp.pad copy, multi-block parallel grid.
    p3 = jax.random.uniform(ks[8], (128, 128), jnp.float32, 0.1, 2.0)
    o3 = jax.random.uniform(ks[9], (128, 128), jnp.float32, 0.1, 2.0)
    a3 = jax.random.normal(ks[10], (128, 128), jnp.float32)
    e3 = jax.random.uniform(ks[11], (128, 128), jnp.float32, 0.0, 1.0)
    _check(p3, o3, a3, e3, max_block_rows=16)

    print("KERNEL_OK")
</pallas_src>

<mosaic_0001>
module attributes {stable_mosaic.version = 11 : i64} {
  func.func @_actor_loss_kernel(%arg0: i32, %arg1: memref<8x128xf32, #tpu.memory_space<vmem>>, %arg2: memref<8x128xf32, #tpu.memory_space<vmem>>, %arg3: memref<8x128xf32, #tpu.memory_space<vmem>>, %arg4: memref<8x128xf32, #tpu.memory_space<vmem>>, %arg5: memref<1x8x128xf32, #tpu.memory_space<vmem>>) attributes {dimension_semantics = [#tpu.dimension_semantics<parallel>], iteration_bounds = array<i64: 1>, scalar_prefetch = 0 : i64, scratch_operands = 0 : i64, tpu.core_type = #tpu.core_type<tc>, window_params = [{transform_indices = @transform_0, window_bounds = array<i64: 8, 128>}, {transform_indices = @transform_1, window_bounds = array<i64: 8, 128>}, {transform_indices = @transform_2, window_bounds = array<i64: 8, 128>}, {transform_indices = @transform_3, window_bounds = array<i64: 8, 128>}, {transform_indices = @transform_4, window_bounds = array<i64: 1, 8, 128>}]} {
    %c0 = arith.constant 0 : index
    %c0_0 = arith.constant 0 : index
    %0 = vector.load %arg1[%c0, %c0_0] : memref<8x128xf32, #tpu.memory_space<vmem>>, vector<8x128xf32>
    %c0_1 = arith.constant 0 : index
    %c0_2 = arith.constant 0 : index
    %1 = vector.load %arg2[%c0_1, %c0_2] : memref<8x128xf32, #tpu.memory_space<vmem>>, vector<8x128xf32>
    %c0_3 = arith.constant 0 : index
    %c0_4 = arith.constant 0 : index
    %2 = vector.load %arg3[%c0_3, %c0_4] : memref<8x128xf32, #tpu.memory_space<vmem>>, vector<8x128xf32>
    %c0_5 = arith.constant 0 : index
    %c0_6 = arith.constant 0 : index
    %3 = vector.load %arg4[%c0_5, %c0_6] : memref<8x128xf32, #tpu.memory_space<vmem>>, vector<8x128xf32>
    %4 = arith.divf %0, %1 : vector<8x128xf32>
    %cst = arith.constant 8.000000e-01 : f32
    %cst_7 = arith.constant 1.200000e+00 : f32
    %5 = vector.broadcast %cst : f32 to vector<8x128xf32>
    %6 = arith.maximumf %5, %4 : vector<8x128xf32>
    %7 = vector.broadcast %cst_7 : f32 to vector<8x128xf32>
    %8 = arith.minimumf %7, %6 : vector<8x128xf32>
    %9 = arith.mulf %8, %2 : vector<8x128xf32>
    %10 = arith.mulf %4, %2 : vector<8x128xf32>
    %11 = arith.minimumf %9, %10 : vector<8x128xf32>
    %cst_8 = arith.constant 0.00999999977 : f32
    %12 = vector.broadcast %cst_8 : f32 to vector<8x128xf32>
    %13 = arith.mulf %12, %3 : vector<8x128xf32>
    %14 = arith.addf %11, %13 : vector<8x128xf32>
    %15 = vector.shape_cast %14 : vector<8x128xf32> to vector<1x8x128xf32>
    %cst_9 = arith.constant dense<0.000000e+00> : vector<8x128xf32>
    %16 = vector.multi_reduction <add>, %15, %cst_9 [0] : vector<1x8x128xf32> to vector<8x128xf32>
    %c0_10 = arith.constant 0 : index
    %c0_11 = arith.constant 0 : index
    %c0_12 = arith.constant 0 : index
    %17 = vector.load %arg5[%c0_10, %c0_11, %c0_12] : memref<1x8x128xf32, #tpu.memory_space<vmem>>, vector<1x8x128xf32>
    %18 = vector.shape_cast %17 : vector<1x8x128xf32> to vector<8x128xf32>
    %19 = vector.shape_cast %16 : vector<8x128xf32> to vector<1x8x128xf32>
    tpu.vector_store %arg5[%c0_10, %c0_11, %c0_12], %19 {strides = array<i32>} : memref<1x8x128xf32, #tpu.memory_space<vmem>>, vector<1x8x128xf32>,
    return
  }
  func.func @transform_0(%arg0: i32) -> (i32, i32) {
    %c0_i32 = arith.constant 0 : i32
    %c0_i32_0 = arith.constant 0 : i32
    return %arg0, %c0_i32 : i32, i32
  }
  func.func @transform_1(%arg0: i32) -> (i32, i32) {
    %c0_i32 = arith.constant 0 : i32
    %c0_i32_0 = arith.constant 0 : i32
    return %arg0, %c0_i32 : i32, i32
  }
  func.func @transform_2(%arg0: i32) -> (i32, i32) {
    %c0_i32 = arith.constant 0 : i32
    %c0_i32_0 = arith.constant 0 : i32
    return %arg0, %c0_i32 : i32, i32
  }
  func.func @transform_3(%arg0: i32) -> (i32, i32) {
    %c0_i32 = arith.constant 0 : i32
    %c0_i32_0 = arith.constant 0 : i32
    return %arg0, %c0_i32 : i32, i32
  }
  func.func @transform_4(%arg0: i32) -> (i32, i32, i32) {
    %c0_i32 = arith.constant 0 : i32
    %c0_i32_0 = arith.constant 0 : i32
    %c0_i32_1 = arith.constant 0 : i32
    return %arg0, %c0_i32, %c0_i32_0 : i32, i32, i32
  }
}

</mosaic_0001>

<bundles_post_ra>
// kernel: tpu_custom_call.1
= control target key start
LH: loop header
LB: loop body
LE: loop exit
PB: predicated region body
PF: predicated region fallthrough
CT: control target
= control target key end

     0   :  { %9 = vsyncpa [#allocation3], 0  ;;  %s264_s0 = inlined_call_operand.hbm [shape: f32[8,128], index: 0, kind: input, shape index: {}]   ;;  %s265_s1 = inlined_call_operand.hbm [shape: f32[8,128], index: 1, kind: input, shape index: {}]   ;;  %s266_s2 = inlined_call_operand.hbm [shape: f32[8,128], index: 2, kind: input, shape index: {}]   ;;  %s267_s3 = inlined_call_operand.vmem [shape: f32[8,128], index: 3, kind: input, shape index: {}]   ;;  %s268_s4 = inlined_call_operand.hbm [shape: f32[1,8,128], index: 4, kind: output, shape index: {}]  }
   0x1   :  { %10 = vsyncpa [#allocation6], 0 }
   0x2   :  { %11 = vsyncpa [#allocation4], 0  ;;  %s184_s15 = smov [#allocation5]   ;;  %s185_s17 = smov [#allocation2]  }
   0x3   :  { %s28_s16 = sshll.u32 %s184_s15, 4  ;;  %s18_s18 = sshll.u32 %s185_s17, 4  ;;  %s29_s16 = int_to_ptr.vmem [resolvable:$true] %s28_s16  ;;  %s19_s18 = int_to_ptr.vmem [resolvable:$true] %s18_s18 }
   0x4   :  { %s90_s21 = scalar_lea.hbm %s265_s1, 128 }
   0x5   :  { %p91_p0 = scmp.ne.s32.totalorder %s265_s1, %s90_s21  ;;  %p94_p1 = scmp.lt.u32.totalorder %s90_s21, %s265_s1 }
   0x7   :  { %p96_p2 = pnand %p94_p1, %p91_p0 }
   0x9   :  { %99 = shalt.err (!%p96_p2)
}
   0xa   :  { %s100_s26 = scalar_lea.vmem %s29_s16, 128  ;;  %p105_p4 = scmp.lt.s32.totalorder %s29_s16, %s29_s16 }
   0xb   :  { %p101_p3 = scmp.ne.s32.totalorder %s29_s16, %s100_s26  ;;  %p106_p5 = scmp.lt.s32.totalorder %s100_s26, %s100_s26 }
   0xd   :  { %p107_p6 = por %p106_p5, %p105_p4 }
   0xf   :  { %p108_p7 = pnand %p107_p6, %p101_p3 }
  0x11   :  { %111 = shalt.err (!%p108_p7)
}
  0x12   :  { %31 = dma.hbm_to_vmem [thread:$0]  %s265_s1, 128, %s29_s16, [#allocation6]  }
  0x13   :  { %s112_s5 = scalar_lea.hbm %s264_s0, 128 }
  0x14   :  { %p113_p8 = scmp.ne.s32.totalorder %s264_s0, %s112_s5  ;;  %p116_p9 = scmp.lt.u32.totalorder %s112_s5, %s264_s0 }
  0x16   :  { %p118_p10 = pnand %p116_p9, %p113_p8 }
  0x18   :  { %121 = shalt.err (!%p118_p10)
}
  0x19   :  { %s122_s10 = scalar_lea.vmem %s19_s18, 128  ;;  %p127_p12 = scmp.lt.s32.totalorder %s19_s18, %s19_s18 }
  0x1a   :  { %p123_p11 = scmp.ne.s32.totalorder %s19_s18, %s122_s10  ;;  %p128_p13 = scmp.lt.s32.totalorder %s122_s10, %s122_s10 }
  0x1c   :  { %p129_p0 = por %p128_p13, %p127_p12 }
  0x1e   :  { %p130_p1 = pnand %p129_p0, %p123_p11 }
  0x20   :  { %133 = shalt.err (!%p130_p1)
}
  0x21   :  { %21 = dma.hbm_to_vmem [thread:$0]  %s264_s0, 128, %s19_s18, [#allocation3]  }
  0x22   :  { %s186_s12 = smov [#allocation7]   ;;  %s134_s16 = scalar_lea.hbm %s266_s2, 128 }
  0x23   :  { %s38_s13 = sshll.u32 %s186_s12, 4  ;;  %p135_p2 = scmp.ne.s32.totalorder %s266_s2, %s134_s16  ;;  %s39_s13 = int_to_ptr.vmem [resolvable:$true] %s38_s13 }
  0x24   :  { %p138_p3 = scmp.lt.u32.totalorder %s134_s16, %s266_s2 }
  0x26   :  { %p140_p4 = pnand %p138_p3, %p135_p2 }
  0x28   :  { %143 = shalt.err (!%p140_p4)
}
  0x29   :  { %s144_s22 = scalar_lea.vmem %s39_s13, 128  ;;  %p149_p6 = scmp.lt.s32.totalorder %s39_s13, %s39_s13 }
  0x2a   :  { %p145_p5 = scmp.ne.s32.totalorder %s39_s13, %s144_s22  ;;  %p150_p7 = scmp.lt.s32.totalorder %s144_s22, %s144_s22 }
  0x2c   :  { %p151_p8 = por %p150_p7, %p149_p6 }
  0x2e   :  { %p152_p9 = pnand %p151_p8, %p145_p5 }
  0x30   :  { %155 = shalt.err (!%p152_p9)
}
  0x31   :  { %41 = dma.hbm_to_vmem [thread:$0]  %s266_s2, 128, %s39_s13, [#allocation6]  }
  0x32   :  { %178 = dma.done.wait [#allocation3], 128  }
  0x33   :  { %179 = vsyncadd [#allocation3], 4294967168 }
  0x34   :  { %180 = dma.done.wait [#allocation6], 256  }
  0x35   :  { %181 = vsyncadd [#allocation6], 4294967040  ;;  %v54_v0 = vld [vmem:[#allocation5] sm:$0xff]  ;;  %v53_v1 = vld [vmem:[#allocation2] sm:$0xff]  ;;  %s187_s2 = smov [#allocation8]  }
  0x36   :  { %88 = vrcp.f32 %v54_v0  ;;  %v55_v4 = vld [vmem:[#allocation7] sm:$0xff]  ;;  %v56_v6 = vld [vmem:[%s267_s3] sm:$0xff]  ;;  %s74_s25 = sshll.u32 %s187_s2, 4  ;;  %s75_s25 = int_to_ptr.vmem [resolvable:$true] %s74_s25 }
  0x37   :  { %v64_v10 = vmul.f32 0.01, %v56_v6  ;;  %s156_s26 = scalar_lea.vmem %s75_s25, 128  ;;  %p161_p11 = scmp.lt.s32.totalorder %s75_s25, %s75_s25 }
  0x38   :  { %p157_p10 = scmp.ne.s32.totalorder %s75_s25, %s156_s26  ;;  %p162_p12 = scmp.lt.s32.totalorder %s156_s26, %s156_s26 }
  0x3a   :  { %p163_p13 = por %p162_p12, %p161_p11 }
  0x3c   :  { %p164_p0 = pnand %p163_p13, %p157_p10 }
  0x40   :  { %v89_v2 = vpop.eup %88 }
  0x41   :  { %v58_v3 = vmul.f32 %v89_v2, %v53_v1 }
  0x43   :  { %v59_v5 = vmax.f32 %v58_v3, 0.8  ;;  %v62_v8 = vmul.f32 %v58_v3, %v55_v4 }
  0x45   :  { %v60_v7 = vmin.f32 %v59_v5, 1.2 }
  0x47   :  { %v61_v9 = vmul.f32 %v60_v7, %v55_v4 }
  0x49   :  { %v63_v11 = vmin.f32 %v61_v9, %v62_v8 }
  0x4b   :  { %v65_v12 = vadd.f32 %v64_v10, %v63_v11 }
  0x4d   :  { %67 = vst [vmem:[#allocation8] sm:$0xff] %v65_v12 }
  0x4e   :  { %167 = shalt.err (!%p164_p0)
}
  0x4f   :  { %s168_s3 = scalar_lea.hbm %s268_s4, 128 }
  0x50   :  { %p169_p1 = scmp.ne.s32.totalorder %s268_s4, %s168_s3  ;;  %p172_p2 = scmp.lt.u32.totalorder %s168_s3, %s268_s4 }
  0x52   :  { %p174_p3 = pnand %p172_p2, %p169_p1 }
  0x54   :  { %177 = shalt.err (!%p174_p3)
}
  0x55   :  { %77 = dma.vmem_to_hbm [thread:$0]  %s75_s25, 128, %s268_s4, [#allocation4]  }
  0x56   :  { %182 = dma.done.wait [#allocation4], 128  }
  0x57   :  { %183 = vsyncadd [#allocation4], 4294967168 }
  0x58   :  { %81 = vsyncpa [#allocation3], 1 }
  0x59   :  { %82 = vsyncpa [#allocation6], 1 }
  0x5a   :  { %83 = vsyncpa [#allocation4], 1 }

</bundles_post_ra>
